<compile_context>
chip_gen: v6e
topology: v6e:2x2x1
jax: 0.10.0
libtpu: 0.0.40
codegen_flags: <defaults>
</compile_context>

<pallas_src>
import jax
import jax.numpy as jnp
from jax.experimental import pallas as pl
from jax.experimental.pallas import tpu as pltpu


def _linear_kernel(x_ref, wt_ref, b_ref, o_ref):
    # x_ref: (tb, D)  wt_ref: (D, 128)  b_ref: (1, C)  o_ref: (tb, C), C <= 128
    acc = jnp.dot(x_ref[...], wt_ref[...], preferred_element_type=jnp.float32)
    c = o_ref.shape[-1]
    o_ref[...] = (acc[:, :c] + b_ref[...]).astype(o_ref.dtype)


def _round_up(x, m):
    return ((x + m - 1) // m) * m


def _pick_tile(B, D, itemsize):
    """Batch-tile size from the per-generation VMEM budget (double-buffered)."""
    try:
        vmem_cap = pltpu.get_tpu_info().vmem_capacity_bytes  # 64 MiB/TC on v7x
    except Exception:
        vmem_cap = 64 * 1024 * 1024                          # v7x-conservative
    budget = min(vmem_cap // 4, 32 * 1024 * 1024)
    w_bytes = 2 * D * 128 * itemsize                 # double-buffered weight
    per_row = 2 * D * itemsize + 2 * 128 * 4         # x dbuf + f32 acc/out
    cap = max(256, ((budget - w_bytes) // per_row) // 256 * 256)
    if B <= min(512, cap):
        return B                                     # single full-extent block
    # >= 2 grid steps keep both v7x TensorCores busy for moderate/large B.
    return max(256, min(cap, 1024, _round_up(-(-B // 2), 256)))


def maml_prepare_head(w, b, dtype=jnp.float32):
    """One-time prep of the classifier head — hoist out of the MAML inner loop.

    w: (C, D) PyTorch-Linear-style weight. C may pack several task heads
       (e.g. n_task * n_way columns), C <= 128.
    b: (C,) bias.
    Returns (wt, b2): wt is the transposed, lane-padded (D, 128) weight;
    b2 is the (1, C) f32 bias row.
    """
    C, D = w.shape
    assert C <= 128, "pack at most 128 output columns into one head"
    wt = jnp.zeros((D, 128), dtype).at[:, :C].set(w.T.astype(dtype))
    b2 = jnp.asarray(b, jnp.float32).reshape(1, C)
    return wt, b2


def maml_forward(x, wt, b2):
    """Pallas implementation of MAML.forward == nn.Linear(feat_dim, n_way).

    x:  (B, D) activations.
    wt: (D, 128) prepared weight from maml_prepare_head.
    b2: (1, C) prepared bias row (C = real output columns).
    Returns (B, C) logits.
    """
    B, D = x.shape
    assert wt.shape == (D, 128), "weight must come from maml_prepare_head"
    n_cols = b2.shape[-1]
    itemsize = jnp.dtype(x.dtype).itemsize

    tb = _pick_tile(B, D, itemsize)
    grid_n = pl.cdiv(B, tb)

    # Explicit scoped-VMEM limit covering the double-buffered working set.
    need = (2 * tb * D * itemsize + 2 * D * 128 * itemsize
            + 2 * tb * max(n_cols, 8) * 4 + (1 << 20))
    vmem_limit = int(min(max(need + (4 << 20), 16 << 20), 48 << 20))

    cost = pl.CostEstimate(
        flops=2 * B * D * 128,                       # padded MXU width
        transcendentals=0,
        bytes_accessed=itemsize * (B * D + D * 128 + B * n_cols) + 4 * n_cols,
    )

    return pl.pallas_call(
        _linear_kernel,
        out_shape=jax.ShapeDtypeStruct((B, n_cols), x.dtype),
        grid_spec=pltpu.PrefetchScalarGridSpec(
            num_scalar_prefetch=0,
            grid=(grid_n,),
            in_specs=[
                pl.BlockSpec((tb, D), lambda i: (i, 0)),    # x tile
                pl.BlockSpec((D, 128), lambda i: (0, 0)),   # prepared weight^T
                pl.BlockSpec((1, n_cols), lambda i: (0, 0)),  # bias row
            ],
            out_specs=pl.BlockSpec((tb, n_cols), lambda i: (i, 0)),
        ),
        compiler_params=pltpu.CompilerParams(
            dimension_semantics=("parallel",) if grid_n > 1 else ("arbitrary",),
            vmem_limit_bytes=vmem_limit,
        ),
        cost_estimate=cost,
    )(x, wt, b2)


if __name__ == "__main__":
    # Small shapes consistent with a few-shot linear classifier head:
    # n_way = 5 classes, batch = 16, feat_dim = 64.
    n_way, feat_dim, batch = 5, 64, 16

    key = jax.random.PRNGKey(0)
    kx, kw, kb, kt, ktb = jax.random.split(key, 5)

    x = jax.random.normal(kx, (batch, feat_dim), dtype=jnp.float32)
    bound = 1.0 / (feat_dim ** 0.5)
    w = jax.random.uniform(kw, (n_way, feat_dim), jnp.float32, -bound, bound)
    b = jax.random.uniform(kb, (n_way,), jnp.float32, -bound, bound)

    # One-time head prep (hoisted out of any training / inner-loop hot path).
    wt, b2 = jax.block_until_ready(maml_prepare_head(w, b))

    out = maml_forward(x, wt, b2)
    jax.block_until_ready(out)
    ref = x @ w.T + b
    assert out.shape == (batch, n_way)
    assert jnp.allclose(out, ref, atol=1e-4, rtol=1e-4)

    # Ragged batch: no jnp.pad of x, no B % tile assert.
    x_r = x[:13]
    out_r = maml_forward(x_r, wt, b2)
    jax.block_until_ready(out_r)
    assert jnp.allclose(out_r, x_r @ w.T + b, atol=1e-4, rtol=1e-4)

    # Meta-batch packing: several task heads share the 128 output lanes.
    n_task = 3
    ws = jax.random.uniform(kt, (n_task, n_way, feat_dim), jnp.float32, -bound, bound)
    bs = jax.random.uniform(ktb, (n_task, n_way), jnp.float32, -bound, bound)
    wt_p, b_p = maml_prepare_head(ws.reshape(n_task * n_way, feat_dim),
                                  bs.reshape(-1))
    out_p = maml_forward(x, wt_p, b_p)                       # (B, n_task*n_way)
    jax.block_until_ready(out_p)
    ref_p = (jnp.einsum("bd,tcd->btc", x, ws) + bs).reshape(batch, n_task * n_way)
    assert jnp.allclose(out_p, ref_p, atol=1e-4, rtol=1e-4)

    # TODO(synk): set_forward / set_forward_loss (inner-loop SGD adaptation with
    # autograd, RNG permutation, accuracy bookkeeping) is meta-training
    # orchestration, not a forward-pass hot path; only forward() is a kernel.
    print("KERNEL_OK")
</pallas_src>

<mosaic_0001>
module attributes {stable_mosaic.version = 11 : i64} {
  func.func @_linear_kernel(%arg0: i32, %arg1: memref<16x64xf32, #tpu.memory_space<vmem>>, %arg2: memref<64x128xf32, #tpu.memory_space<vmem>>, %arg3: memref<1x5xf32, #tpu.memory_space<vmem>>, %arg4: memref<16x5xf32, #tpu.memory_space<vmem>>) attributes {dimension_semantics = [#tpu.dimension_semantics<arbitrary>], iteration_bounds = array<i64: 1>, scalar_prefetch = 0 : i64, scratch_operands = 0 : i64, tpu.core_type = #tpu.core_type<tc>, window_params = [{transform_indices = @transform_0, window_bounds = array<i64: 16, 64>}, {pipeline_mode = #tpu.pipeline_mode<synchronous>, transform_indices = @transform_1, window_bounds = array<i64: 64, 128>}, {pipeline_mode = #tpu.pipeline_mode<synchronous>, transform_indices = @transform_2, window_bounds = array<i64: 1, 5>}, {transform_indices = @transform_3, window_bounds = array<i64: 16, 5>}]} {
    %c0 = arith.constant 0 : index
    %c0_0 = arith.constant 0 : index
    %0 = vector.load %arg1[%c0, %c0_0] : memref<16x64xf32, #tpu.memory_space<vmem>>, vector<16x64xf32>
    %c0_1 = arith.constant 0 : index
    %c0_2 = arith.constant 0 : index
    %1 = vector.load %arg2[%c0_1, %c0_2] : memref<64x128xf32, #tpu.memory_space<vmem>>, vector<64x128xf32>
    %cst = arith.constant dense<0.000000e+00> : vector<16x128xf32>
    %2 = tpu.matmul %0, %1, %cst {dimension_numbers = #tpu.dot_dimension_numbers<[1], [0], [0], [1], [0, 0, 1, 1], [], []>} : vector<16x64xf32>, vector<64x128xf32>, vector<16x128xf32> -> vector<16x128xf32>
    %3 = vector.extract_strided_slice %2 {offsets = [0, 0], sizes = [16, 5], strides = [1, 1]} : vector<16x128xf32> to vector<16x5xf32>
    %c0_3 = arith.constant 0 : index
    %c0_4 = arith.constant 0 : index
    %4 = vector.load %arg3[%c0_3, %c0_4] : memref<1x5xf32, #tpu.memory_space<vmem>>, vector<1x5xf32>
    %5 = vector.broadcast %4 : vector<1x5xf32> to vector<16x5xf32>
    %6 = arith.addf %3, %5 : vector<16x5xf32>
    %c0_5 = arith.constant 0 : index
    %c0_6 = arith.constant 0 : index
    %7 = vector.load %arg4[%c0_5, %c0_6] : memref<16x5xf32, #tpu.memory_space<vmem>>, vector<16x5xf32>
    tpu.vector_store %arg4[%c0_5, %c0_6], %6 {strides = array<i32>} : memref<16x5xf32, #tpu.memory_space<vmem>>, vector<16x5xf32>,
    return
  }
  func.func @transform_0(%arg0: i32) -> (i32, i32) {
    %c0_i32 = arith.constant 0 : i32
    %c0_i32_0 = arith.constant 0 : i32
    return %arg0, %c0_i32 : i32, i32
  }
  func.func @transform_1(%arg0: i32) -> (i32, i32) {
    %c0_i32 = arith.constant 0 : i32
    %c0_i32_0 = arith.constant 0 : i32
    %c0_i32_1 = arith.constant 0 : i32
    return %c0_i32, %c0_i32_0 : i32, i32
  }
  func.func @transform_2(%arg0: i32) -> (i32, i32) {
    %c0_i32 = arith.constant 0 : i32
    %c0_i32_0 = arith.constant 0 : i32
    %c0_i32_1 = arith.constant 0 : i32
    return %c0_i32, %c0_i32_0 : i32, i32
  }
  func.func @transform_3(%arg0: i32) -> (i32, i32) {
    %c0_i32 = arith.constant 0 : i32
    %c0_i32_0 = arith.constant 0 : i32
    return %arg0, %c0_i32 : i32, i32
  }
}

</mosaic_0001>

<bundles_post_ra>
// kernel: tpu_custom_call.1
= control target key start
LH: loop header
LB: loop body
LE: loop exit
PB: predicated region body
PF: predicated region fallthrough
CT: control target
= control target key end

     0   :  { %8 = vsyncpa [#allocation3], 0  ;;  %s273_s0 = inlined_call_operand.hbm [shape: f32[16,64], index: 0, kind: input, shape index: {}]   ;;  %s274_s1 = inlined_call_operand.hbm [shape: f32[64,128], index: 1, kind: input, shape index: {}]   ;;  %s275_s2 = inlined_call_operand.vmem [shape: f32[1,5], index: 2, kind: input, shape index: {}]   ;;  %s276_s3 = inlined_call_operand.vmem [shape: f32[16,5], index: 3, kind: output, shape index: {}]  }
   0x1   :  { %9 = vsyncpa [#allocation5], 0  ;;  %s232_s12 = smov [#allocation2]  }
   0x2   :  { %s15_s13 = sshll.u32 %s232_s12, 4  ;;  %s16_s13 = int_to_ptr.vmem [resolvable:$true] %s15_s13 }
   0x3   :  { %s196_s14 = scalar_lea.vmem %s16_s13, 256  ;;  %p201_p1 = scmp.lt.s32.totalorder %s16_s13, %s16_s13 }
   0x4   :  { %p197_p0 = scmp.ne.s32.totalorder %s16_s13, %s196_s14  ;;  %p202_p2 = scmp.lt.s32.totalorder %s196_s14, %s196_s14 }
   0x6   :  { %p203_p3 = por %p202_p2, %p201_p1 }
   0x8   :  { %p204_p4 = pnand %p203_p3, %p197_p0 }
   0xa   :  { %207 = shalt.err (!%p204_p4)
}
   0xb   :  { %s233_s15 = smov 128   ;;  %s234_s16 = smov 8  }
   0xc   :  { %21 = dma.hbm_to_vmem [thread:$0]  %s273_s0, 256, %s16_s13, [#allocation3], %s233_s15, %s233_s15, %s234_s16  }
   0xd   :  { %s235_s19 = smov [#allocation4]  }
   0xe   :  { %s27_s20 = sshll.u32 %s235_s19, 4  ;;  %s28_s20 = int_to_ptr.vmem [resolvable:$true] %s27_s20 }
   0xf   :  { %s216_s21 = scalar_lea.vmem %s28_s20, 1024  ;;  %p221_p6 = scmp.lt.s32.totalorder %s28_s20, %s28_s20 }
  0x10   :  { %p217_p5 = scmp.ne.s32.totalorder %s28_s20, %s216_s21  ;;  %p222_p7 = scmp.lt.s32.totalorder %s216_s21, %s216_s21 }
  0x12   :  { %p223_p8 = por %p222_p7, %p221_p6 }
  0x14   :  { %p224_p9 = pnand %p223_p8, %p217_p5 }
  0x16   :  { %227 = shalt.err (!%p224_p9)
}
  0x17   :  { %33 = dma.hbm_to_vmem [thread:$0]  %s274_s1, 1024, %s28_s20, [#allocation5], %s233_s15, %s233_s15, %s234_s16  }
  0x18   :  { %228 = dma.done.wait [#allocation3], 256  }
  0x19   :  { %229 = vsyncadd [#allocation3], 4294967040 }
  0x1a   :  { %230 = dma.done.wait [#allocation5], 1024  }
  0x1b   :  { %231 = vsyncadd [#allocation5], 4294966272  ;;  %v51_v0 = vld [vmem:[#allocation4 + $0x38] sm:$0xff]  ;;  %v50_v1 = vld [vmem:[#allocation4 + $0x30] sm:$0xff]  ;;  %vm52_vm0 = vcmask 523264   ;;  %vm143_vm1 = vcmask 39936  }
  0x1c   :  { %165 = vmatprep.subr.mxu0 %v51_v0  ;;  %v49_v2 = vld [vmem:[#allocation4 + $0x28] sm:$0xff]  ;;  %v42_v3 = vld [vmem:[#allocation2] sm:$0xff]  ;;  %v48_v4 = vld [vmem:[#allocation4 + $0x20] sm:$0xff] }
  0x1d   :  { %166 = vmatpush3.msra.mxu0 %v51_v0  ;;  %181 = vmatprep.mubr.msk.f32.mxu0 %vm52_vm0, %v42_v3  ;;  %v47_v5 = vld [vmem:[#allocation4 + $0x18] sm:$0xff]  ;;  %v46_v6 = vld [vmem:[#allocation4 + $0x10] sm:$0xff]  ;;  %v45_v7 = vld [vmem:[#allocation4 + $0x8] sm:$0xff] }
  0x1e   :  { %167 = vmatprep.subr.mxu0 %v50_v1  ;;  %v44_v8 = vld [vmem:[#allocation4] sm:$0xff]  ;;  %v43_v9 = vld [vmem:[#allocation2 + $0x8] sm:$0xff]  ;;  %v154_v10 = vld [vmem:[%s275_s2] ss:$0 sm:$0xff] }
  0x1f   :  { %168 = vmatpush3.msra.mxu0 %v50_v1 }
  0x20   :  { %169 = vmatprep.subr.mxu0 %v49_v2 }
  0x21   :  { %170 = vmatpush3.msra.mxu0 %v49_v2 }
  0x22   :  { %171 = vmatprep.subr.mxu0 %v48_v4 }
  0x23   :  { %172 = vmatpush3.msra.mxu0 %v48_v4 }
  0x24   :  { %173 = vmatprep.subr.mxu0 %v47_v5 }
  0x25   :  { %174 = vmatpush3.msra.mxu0 %v47_v5 }
  0x26   :  { %175 = vmatprep.subr.mxu0 %v46_v6 }
  0x27   :  { %176 = vmatpush3.msra.mxu0 %v46_v6 }
  0x28   :  { %177 = vmatprep.subr.mxu0 %v45_v7 }
  0x29   :  { %178 = vmatpush3.msra.mxu0 %v45_v7 }
  0x2a   :  { %179 = vmatprep.subr.mxu0 %v44_v8 }
  0x2b   :  { %180 = vmatpush3.msra.mxu0 %v44_v8 }
  0x2c   :  { %182 = vmatmul.mubr.msk.f32.vlgmr.msra.gmra.mxu0 %vm52_vm0, %v43_v9 }
  0xec   :  { %v183_v11 = vpop.f32.mrf.mxu0 }
  0xed   :  { %v142_v12 = vadd.f32 %v183_v11, %v154_v10 }
  0xee   :  { %v125_v13 = vpop.f32.mrf.mxu0 }
  0xef   :  { %145 = vst.msk [vmem:[%s276_s3 + $0x8] sm:$0xff] %vm143_vm1, %v142_v12  ;;  %v141_v14 = vadd.f32 %v154_v10, %v125_v13 }
  0xf1   :  { %144 = vst.msk [vmem:[%s276_s3] sm:$0xff] %vm143_vm1, %v141_v14 }
  0xf2   :  { %150 = vsyncpa [#allocation3], 1 }
  0xf3   :  { %151 = vsyncpa [#allocation5], 1 }

</bundles_post_ra>
